<compile_context>
chip_gen: v7x
topology: tpu7x:2x2x1
jax: 0.10.0
libtpu: 0.0.40
codegen_flags: <defaults>
</compile_context>

<pallas_src>
import functools

import jax
import jax.numpy as jnp
import numpy as np
from jax.experimental import pallas as pl
from jax.experimental.pallas import tpu as pltpu


def residual_block_kernel(x_ref, w1_ref, b1_ref, w2_ref, b2_ref, o_ref):
    # x_ref : (b_tile, rows, gwc) f32  — b_tile images, rows = H/group, gwc = group*W*C
    # w*_ref: (3*gwc, gwc)        bf16 — band weights stacked over vertical offsets {-1,0,+1}
    # b*_ref: (1, gwc)            f32  — per-channel bias tiled across group*W
    # o_ref : (b_tile, rows, gwc) f32
    b_tile, rows, gwc = x_ref.shape
    m = b_tile * rows
    x = x_ref[...].reshape(m, gwc)                 # fold batch into the matmul M dimension

    # Per-image vertical-boundary masks (image-local row index along the folded M axis).
    row = jax.lax.broadcasted_iota(jnp.int32, (m, gwc), 0) % rows
    has_above = row != 0
    has_below = row != rows - 1

    def shifted(v):
        # +-1 row shifts via XLU sublane rotation; the mask realizes the vertical zero
        # padding of the 3x3 conv and keeps the shift from crossing image boundaries.
        v_dn = jnp.where(has_above, pltpu.roll(v, shift=1, axis=0), 0.0)      # out[i]=v[i-1]
        v_up = jnp.where(has_below, pltpu.roll(v, shift=m - 1, axis=0), 0.0)  # out[i]=v[i+1]
        return jnp.concatenate([v_dn, v, v_up], axis=-1).astype(jnp.bfloat16)  # (m, 3*gwc)

    def conv3x3(v, w_ref, b_ref):
        # Single MXU matmul with K = 3*gwc (horizontal zero padding is baked into the band).
        return jnp.dot(shifted(v), w_ref[...], preferred_element_type=jnp.float32) + b_ref[...]

    h = jnp.maximum(conv3x3(x, w1_ref, b1_ref), 0.0)       # conv1 + ReLU, stays resident
    y = jnp.maximum(conv3x3(h, w2_ref, b2_ref) + x, 0.0)   # conv2 + residual + final ReLU
    o_ref[...] = y.reshape(b_tile, rows, gwc).astype(o_ref.dtype)  # full 128-lane-dense store


def band_conv_weights(w_hwio, width, group):
    # Block-tridiagonal band weights for a 3x3 SAME conv on the row-grouped layout
    # v[i, (r*width + j)*cin + ci] = x[group*i + r, j, ci].
    # NOTE: the dense band does ~group*W/3 more MACs than the conv strictly needs; once
    # gwc >~ 512 tile block-tridiagonally over W (or use a per-tap CxC formulation) to
    # recover the zero FLOPs and the gwc^2 VMEM footprint (v7x's 64 MiB hits first).
    kh, kw, cin, cout = w_hwio.shape
    d = jnp.arange(3) - 1
    rp = jnp.arange(group)
    r = jnp.arange(group)
    jp = jnp.arange(width)
    j = jnp.arange(width)
    ky = group * d[:, None, None] + rp[None, :, None] - r[None, None, :] + 1   # (3, g, g)
    kx = jp[:, None] - j[None, :] + 1                                          # (W, W)
    ky_ok = (ky >= 0) & (ky < kh)
    kx_ok = (kx >= 0) & (kx < kw)
    blk = w_hwio[jnp.clip(ky, 0, kh - 1)[:, :, :, None, None],
                 jnp.clip(kx, 0, kw - 1)[None, None, None, :, :]]
    # blk: (3, g, g, W, W, cin, cout) indexed [d, rp, r, jp, j, ci, co]
    mask = ky_ok[:, :, :, None, None] & kx_ok[None, None, None, :, :]
    blk = blk * mask[..., None, None].astype(blk.dtype)
    wb = jnp.transpose(blk, (0, 1, 3, 5, 2, 4, 6))            # (d, rp, jp, ci, r, j, co)
    return wb.reshape(3, group * width * cin, group * width * cout)


def choose_row_group(height, width, channels):
    # Smallest divisor g of H such that g*W*C is a multiple of 128 (lane-dense stores).
    wc = width * channels
    for g in range(1, height + 1):
        if height % g == 0 and (g * wc) % 128 == 0:
            return g
    # TODO(synk): no divisor of H makes the lane dim a multiple of 128; fall back to the
    # widest-lane grouping (masked-store slow path) instead of silently using group=1.
    candidates = [g for g in range(1, height + 1) if height % g == 0 and g * wc <= 2048]
    return max(candidates) if candidates else 1


def prepare_residual_block_params(w1_hwio, b1, w2_hwio, b2, width, group):
    # Precompute the lane-dense band weights / tiled biases ONCE per weight set
    # (hoisted out of the per-call forward path; weights are HWIO = torch.permute(2,3,1,0)).
    cin = w1_hwio.shape[2]
    gwc = group * width * cin
    wb1 = band_conv_weights(w1_hwio, width, group).reshape(3 * gwc, -1).astype(jnp.bfloat16)
    wb2 = band_conv_weights(w2_hwio, width, group).reshape(3 * gwc, -1).astype(jnp.bfloat16)
    b1r = jnp.tile(b1, group * width).reshape(1, -1).astype(jnp.float32)
    b2r = jnp.tile(b2, group * width).reshape(1, -1).astype(jnp.float32)
    return wb1, b1r, wb2, b2r


@functools.partial(jax.jit, static_argnames=("single_buffer_weights",))
def residual_block_nchw(x_nchw, wb1, b1r, wb2, b2r, *, single_buffer_weights=True):
    # PyTorch-facing wrapper: NCHW in, NCHW out.  The NCHW<->row-layout transposes are real
    # (small) copies done once outside the kernel.
    B, C, H, W = x_nchw.shape
    gwc = wb1.shape[1]
    group = gwc // (W * C)
    rows = H // group

    # v7x has 2 TensorCores: keep a parallel grid axis of size 2 when B allows it and fold
    # the remaining batch into the matmul M dimension (fewer grid steps, taller M).
    grid_b = 2 if (B % 2 == 0 and B >= 2) else 1
    b_tile = B // grid_b

    x_rows = jnp.transpose(x_nchw, (0, 2, 3, 1)).reshape(B, rows, gwc).astype(jnp.float32)

    # Constant-index blocks: single-buffer them (double-buffering never-changing weights is
    # pure VMEM waste; matters on v7x's 64 MiB VMEM as gwc grows).
    const_kw = {"pipeline_mode": pl.Buffered(1)} if single_buffer_weights else {}
    # NOTE(v7x): band weights scale as 3*gwc^2*2B per conv; above gwc ~1K either tile them
    # over a K/N grid axis or exploit the block-tridiagonal sparsity before VMEM runs out.

    out_rows = pl.pallas_call(
        residual_block_kernel,
        out_shape=jax.ShapeDtypeStruct((B, rows, gwc), jnp.float32),
        grid_spec=pltpu.PrefetchScalarGridSpec(
            num_scalar_prefetch=0,
            grid=(grid_b,),
            in_specs=[
                pl.BlockSpec((b_tile, rows, gwc), lambda b: (b, 0, 0)),
                pl.BlockSpec((3 * gwc, gwc), lambda b: (0, 0), **const_kw),
                pl.BlockSpec((1, gwc), lambda b: (0, 0), **const_kw),
                pl.BlockSpec((3 * gwc, gwc), lambda b: (0, 0), **const_kw),
                pl.BlockSpec((1, gwc), lambda b: (0, 0), **const_kw),
            ],
            out_specs=pl.BlockSpec((b_tile, rows, gwc), lambda b: (b, 0, 0)),
        ),
        compiler_params=pltpu.CompilerParams(
            dimension_semantics=("parallel",),          # v7x: shard the batch over 2 TCs
            vmem_limit_bytes=32 * 1024 * 1024,          # safe on v5e/v6e/v7x at this size
        ),
    )(x_rows, wb1, b1r, wb2, b2r)

    y_nhwc = out_rows.reshape(B, H, W, C)
    return jnp.transpose(y_nhwc, (0, 3, 1, 2)).astype(x_nchw.dtype)


def reference_nhwc(x, w1, b1, w2, b2):
    # Plain-JAX (f32) reference of the same forward pass.
    def conv(v, w, b):
        y = jax.lax.conv_general_dilated(
            v, w, window_strides=(1, 1), padding="SAME",
            dimension_numbers=("NHWC", "HWIO", "NHWC"))
        return y + b.reshape(1, 1, 1, -1)
    h = jax.nn.relu(conv(x, w1, b1))
    return jax.nn.relu(conv(h, w2, b2) + x)


if __name__ == "__main__":
    B, C, H, W = 2, 4, 16, 16

    key = jax.random.PRNGKey(0)
    kxi, kw1, kb1, kw2, kb2 = jax.random.split(key, 5)

    # Deterministic parameter init (shapes match torch.nn.Conv2d(C, C, 3, padding=1)).
    fan_in = C * 3 * 3
    bound = 1.0 / np.sqrt(fan_in)
    w1 = jax.random.uniform(kw1, (3, 3, C, C), jnp.float32, -bound, bound)  # HWIO
    b1 = jax.random.uniform(kb1, (C,), jnp.float32, -bound, bound)
    w2 = jax.random.uniform(kw2, (3, 3, C, C), jnp.float32, -bound, bound)
    b2 = jax.random.uniform(kb2, (C,), jnp.float32, -bound, bound)

    # Input in PyTorch's NCHW convention.
    x_nchw = jax.random.normal(kxi, (B, C, H, W), jnp.float32)

    # One-time parameter preparation (hoisted out of the forward path).
    group = choose_row_group(H, W, C)          # -> 2, so gwc = 2*16*4 = 128 (lane-dense)
    wb1, b1r, wb2, b2r = prepare_residual_block_params(w1, b1, w2, b2, W, group)

    try:
        out = jax.block_until_ready(residual_block_nchw(x_nchw, wb1, b1r, wb2, b2r))
    except Exception:
        # This jax/libtpu build rejects pl.Buffered(1) single-buffering of constant blocks;
        # retry with default double-buffering (identical numerics, slightly more VMEM).
        out = jax.block_until_ready(
            residual_block_nchw(x_nchw, wb1, b1r, wb2, b2r, single_buffer_weights=False))

    # Cross-check against a plain-JAX f32 reference.  Tolerances loosened because the
    # kernel's matmul operands are bf16 (f32 accumulation on the MXU).
    x_nhwc = jnp.transpose(x_nchw, (0, 2, 3, 1))
    ref = jnp.transpose(reference_nhwc(x_nhwc, w1, b1, w2, b2), (0, 3, 1, 2))
    np.testing.assert_allclose(np.asarray(out), np.asarray(ref), rtol=2e-2, atol=4e-2)

    print("KERNEL_OK")
</pallas_src>

<mosaic_0001>
module attributes {stable_mosaic.version = 11 : i64} {
  func.func @residual_block_kernel(%arg0: i32, %arg1: memref<1x8x128xf32, #tpu.memory_space<vmem>>, %arg2: memref<384x128xbf16, #tpu.memory_space<vmem>>, %arg3: memref<1x128xf32, #tpu.memory_space<vmem>>, %arg4: memref<384x128xbf16, #tpu.memory_space<vmem>>, %arg5: memref<1x128xf32, #tpu.memory_space<vmem>>, %arg6: memref<1x8x128xf32, #tpu.memory_space<vmem>>) attributes {dimension_semantics = [#tpu.dimension_semantics<parallel>], iteration_bounds = array<i64: 2>, scalar_prefetch = 0 : i64, scratch_operands = 0 : i64, tpu.core_type = #tpu.core_type<tc>, window_params = [{transform_indices = @transform_0, window_bounds = array<i64: 1, 8, 128>}, {pipeline_mode = #tpu.pipeline_mode<synchronous>, transform_indices = @transform_1, window_bounds = array<i64: 384, 128>}, {pipeline_mode = #tpu.pipeline_mode<synchronous>, transform_indices = @transform_2, window_bounds = array<i64: 1, 128>}, {pipeline_mode = #tpu.pipeline_mode<synchronous>, transform_indices = @transform_3, window_bounds = array<i64: 384, 128>}, {pipeline_mode = #tpu.pipeline_mode<synchronous>, transform_indices = @transform_4, window_bounds = array<i64: 1, 128>}, {transform_indices = @transform_5, window_bounds = array<i64: 1, 8, 128>}]} {
    %c0 = arith.constant 0 : index
    %c0_0 = arith.constant 0 : index
    %c0_1 = arith.constant 0 : index
    %0 = vector.load %arg1[%c0, %c0_0, %c0_1] : memref<1x8x128xf32, #tpu.memory_space<vmem>>, vector<1x8x128xf32>
    %1 = vector.shape_cast %0 : vector<1x8x128xf32> to vector<8x128xf32>
    %2 = tpu.iota {dimensions = array<i32: 0>} : vector<8x128xi32>
    %c8_i32 = arith.constant 8 : i32
    %c0_i32 = arith.constant 0 : i32
    %3 = arith.cmpi eq, %c8_i32, %c0_i32 : i32
    %c1_i32 = arith.constant 1 : i32
    %4 = arith.select %3, %c1_i32, %c8_i32 : i32
    %5 = vector.broadcast %4 : i32 to vector<8x128xi32>
    %6 = arith.remsi %2, %5 : vector<8x128xi32>
    %c0_i32_2 = arith.constant 0 : i32
    %7 = vector.broadcast %c0_i32_2 : i32 to vector<8x128xi32>
    %8 = arith.cmpi ne, %6, %7 : vector<8x128xi32>
    %c0_i32_3 = arith.constant 0 : i32
    %9 = vector.broadcast %c0_i32_3 : i32 to vector<8x128xi32>
    %10 = arith.cmpi slt, %6, %9 : vector<8x128xi32>
    %c0_i32_4 = arith.constant 0 : i32
    %11 = arith.cmpi slt, %4, %c0_i32_4 : i32
    %12 = vector.broadcast %11 : i1 to vector<8x128xi1>
    %13 = vector.broadcast %12 : vector<8x128xi1> to vector<8x128xi1>
    %14 = arith.xori %10, %13 : vector<8x128xi1>
    %15 = arith.andi %14, %8 : vector<8x128xi1>
    %16 = vector.broadcast %4 : i32 to vector<8x128xi32>
    %17 = arith.addi %6, %16 : vector<8x128xi32>
    %18 = arith.select %15, %17, %6 : vector<8x128xi1>, vector<8x128xi32>
    %c0_i32_5 = arith.constant 0 : i32
    %19 = vector.broadcast %c0_i32_5 : i32 to vector<8x128xi32>
    %20 = arith.cmpi ne, %18, %19 : vector<8x128xi32>
    %c7_i32 = arith.constant 7 : i32
    %21 = vector.broadcast %c7_i32 : i32 to vector<8x128xi32>
    %22 = arith.cmpi ne, %18, %21 : vector<8x128xi32>
    %c1_i32_6 = arith.constant 1 : i32
    %23 = tpu.dynamic_rotate %1 by %c1_i32_6 dim 0 : vector<8x128xf32>, i32 -> vector<8x128xf32>
    %cst = arith.constant 0.000000e+00 : f32
    %24 = vector.broadcast %cst : f32 to vector<8x128xf32>
    %25 = arith.select %20, %23, %24 : vector<8x128xi1>, vector<8x128xf32>
    %c7_i32_7 = arith.constant 7 : i32
    %26 = tpu.dynamic_rotate %1 by %c7_i32_7 dim 0 : vector<8x128xf32>, i32 -> vector<8x128xf32>
    %cst_8 = arith.constant 0.000000e+00 : f32
    %27 = vector.broadcast %cst_8 : f32 to vector<8x128xf32>
    %28 = arith.select %22, %26, %27 : vector<8x128xi1>, vector<8x128xf32>
    %29 = tpu.concatenate %25, %1, %28 in 1 : vector<8x128xf32>, vector<8x128xf32>, vector<8x128xf32> -> vector<8x384xf32>
    %30 = arith.truncf %29 : vector<8x384xf32> to vector<8x384xbf16>
    %c0_9 = arith.constant 0 : index
    %c0_10 = arith.constant 0 : index
    %31 = vector.load %arg2[%c0_9, %c0_10] : memref<384x128xbf16, #tpu.memory_space<vmem>>, vector<384x128xbf16>
    %cst_11 = arith.constant dense<0.000000e+00> : vector<8x128xf32>
    %32 = tpu.matmul %30, %31, %cst_11 {dimension_numbers = #tpu.dot_dimension_numbers<[1], [0], [0], [1], [0, 0, 1, 1], [], []>} : vector<8x384xbf16>, vector<384x128xbf16>, vector<8x128xf32> -> vector<8x128xf32>
    %c0_12 = arith.constant 0 : index
    %c0_13 = arith.constant 0 : index
    %33 = vector.load %arg3[%c0_12, %c0_13] : memref<1x128xf32, #tpu.memory_space<vmem>>, vector<1x128xf32>
    %34 = vector.broadcast %33 : vector<1x128xf32> to vector<8x128xf32>
    %35 = arith.addf %32, %34 : vector<8x128xf32>
    %cst_14 = arith.constant 0.000000e+00 : f32
    %36 = vector.broadcast %cst_14 : f32 to vector<8x128xf32>
    %37 = arith.maximumf %35, %36 : vector<8x128xf32>
    %c1_i32_15 = arith.constant 1 : i32
    %38 = tpu.dynamic_rotate %37 by %c1_i32_15 dim 0 : vector<8x128xf32>, i32 -> vector<8x128xf32>
    %cst_16 = arith.constant 0.000000e+00 : f32
    %39 = vector.broadcast %cst_16 : f32 to vector<8x128xf32>
    %40 = arith.select %20, %38, %39 : vector<8x128xi1>, vector<8x128xf32>
    %c7_i32_17 = arith.constant 7 : i32
    %41 = tpu.dynamic_rotate %37 by %c7_i32_17 dim 0 : vector<8x128xf32>, i32 -> vector<8x128xf32>
    %cst_18 = arith.constant 0.000000e+00 : f32
    %42 = vector.broadcast %cst_18 : f32 to vector<8x128xf32>
    %43 = arith.select %22, %41, %42 : vector<8x128xi1>, vector<8x128xf32>
    %44 = tpu.concatenate %40, %37, %43 in 1 : vector<8x128xf32>, vector<8x128xf32>, vector<8x128xf32> -> vector<8x384xf32>
    %45 = arith.truncf %44 : vector<8x384xf32> to vector<8x384xbf16>
    %c0_19 = arith.constant 0 : index
    %c0_20 = arith.constant 0 : index
    %46 = vector.load %arg4[%c0_19, %c0_20] : memref<384x128xbf16, #tpu.memory_space<vmem>>, vector<384x128xbf16>
    %cst_21 = arith.constant dense<0.000000e+00> : vector<8x128xf32>
    %47 = tpu.matmul %45, %46, %cst_21 {dimension_numbers = #tpu.dot_dimension_numbers<[1], [0], [0], [1], [0, 0, 1, 1], [], []>} : vector<8x384xbf16>, vector<384x128xbf16>, vector<8x128xf32> -> vector<8x128xf32>
    %c0_22 = arith.constant 0 : index
    %c0_23 = arith.constant 0 : index
    %48 = vector.load %arg5[%c0_22, %c0_23] : memref<1x128xf32, #tpu.memory_space<vmem>>, vector<1x128xf32>
    %49 = vector.broadcast %48 : vector<1x128xf32> to vector<8x128xf32>
    %50 = arith.addf %47, %49 : vector<8x128xf32>
    %51 = arith.addf %50, %1 : vector<8x128xf32>
    %cst_24 = arith.constant 0.000000e+00 : f32
    %52 = vector.broadcast %cst_24 : f32 to vector<8x128xf32>
    %53 = arith.maximumf %51, %52 : vector<8x128xf32>
    %54 = vector.shape_cast %53 : vector<8x128xf32> to vector<1x8x128xf32>
    %c0_25 = arith.constant 0 : index
    %c0_26 = arith.constant 0 : index
    %c0_27 = arith.constant 0 : index
    %55 = vector.load %arg6[%c0_25, %c0_26, %c0_27] : memref<1x8x128xf32, #tpu.memory_space<vmem>>, vector<1x8x128xf32>
    tpu.vector_store %arg6[%c0_25, %c0_26, %c0_27], %54 {strides = array<i32>} : memref<1x8x128xf32, #tpu.memory_space<vmem>>, vector<1x8x128xf32>,
    return
  }
  func.func @transform_0(%arg0: i32) -> (i32, i32, i32) {
    %c0_i32 = arith.constant 0 : i32
    %c0_i32_0 = arith.constant 0 : i32
    %c0_i32_1 = arith.constant 0 : i32
    return %arg0, %c0_i32, %c0_i32_0 : i32, i32, i32
  }
  func.func @transform_1(%arg0: i32) -> (i32, i32) {
    %c0_i32 = arith.constant 0 : i32
    %c0_i32_0 = arith.constant 0 : i32
    %c0_i32_1 = arith.constant 0 : i32
    return %c0_i32, %c0_i32_0 : i32, i32
  }
  func.func @transform_2(%arg0: i32) -> (i32, i32) {
    %c0_i32 = arith.constant 0 : i32
    %c0_i32_0 = arith.constant 0 : i32
    %c0_i32_1 = arith.constant 0 : i32
    return %c0_i32, %c0_i32_0 : i32, i32
  }
  func.func @transform_3(%arg0: i32) -> (i32, i32) {
    %c0_i32 = arith.constant 0 : i32
    %c0_i32_0 = arith.constant 0 : i32
    %c0_i32_1 = arith.constant 0 : i32
    return %c0_i32, %c0_i32_0 : i32, i32
  }
  func.func @transform_4(%arg0: i32) -> (i32, i32) {
    %c0_i32 = arith.constant 0 : i32
    %c0_i32_0 = arith.constant 0 : i32
    %c0_i32_1 = arith.constant 0 : i32
    return %c0_i32, %c0_i32_0 : i32, i32
  }
  func.func @transform_5(%arg0: i32) -> (i32, i32, i32) {
    %c0_i32 = arith.constant 0 : i32
    %c0_i32_0 = arith.constant 0 : i32
    %c0_i32_1 = arith.constant 0 : i32
    return %arg0, %c0_i32, %c0_i32_0 : i32, i32, i32
  }
}

module attributes {stable_mosaic.version = 11 : i64} {
  func.func @residual_block_kernel(%arg0: i32, %arg1: memref<1x8x128xf32, #tpu.memory_space<vmem>>, %arg2: memref<384x128xbf16, #tpu.memory_space<vmem>>, %arg3: memref<1x128xf32, #tpu.memory_space<vmem>>, %arg4: memref<384x128xbf16, #tpu.memory_space<vmem>>, %arg5: memref<1x128xf32, #tpu.memory_space<vmem>>, %arg6: memref<1x8x128xf32, #tpu.memory_space<vmem>>) attributes {dimension_semantics = [#tpu.dimension_semantics<parallel>], iteration_bounds = array<i64: 2>, scalar_prefetch = 0 : i64, scratch_operands = 0 : i64, tpu.core_type = #tpu.core_type<tc>, window_params = [{transform_indices = @transform_0, window_bounds = array<i64: 1, 8, 128>}, {pipeline_mode = #tpu.pipeline_mode<synchronous>, transform_indices = @transform_1, window_bounds = array<i64: 384, 128>}, {pipeline_mode = #tpu.pipeline_mode<synchronous>, transform_indices = @transform_2, window_bounds = array<i64: 1, 128>}, {pipeline_mode = #tpu.pipeline_mode<synchronous>, transform_indices = @transform_3, window_bounds = array<i64: 384, 128>}, {pipeline_mode = #tpu.pipeline_mode<synchronous>, transform_indices = @transform_4, window_bounds = array<i64: 1, 128>}, {transform_indices = @transform_5, window_bounds = array<i64: 1, 8, 128>}]} {
    %c0 = arith.constant 0 : index
    %c0_0 = arith.constant 0 : index
    %c0_1 = arith.constant 0 : index
    %0 = vector.load %arg1[%c0, %c0_0, %c0_1] : memref<1x8x128xf32, #tpu.memory_space<vmem>>, vector<1x8x128xf32>
    %1 = vector.shape_cast %0 : vector<1x8x128xf32> to vector<8x128xf32>
    %2 = tpu.iota {dimensions = array<i32: 0>} : vector<8x128xi32>
    %c8_i32 = arith.constant 8 : i32
    %c0_i32 = arith.constant 0 : i32
    %3 = arith.cmpi eq, %c8_i32, %c0_i32 : i32
    %c1_i32 = arith.constant 1 : i32
    %4 = arith.select %3, %c1_i32, %c8_i32 : i32
    %5 = vector.broadcast %4 : i32 to vector<8x128xi32>
    %6 = arith.remsi %2, %5 : vector<8x128xi32>
    %c0_i32_2 = arith.constant 0 : i32
    %7 = vector.broadcast %c0_i32_2 : i32 to vector<8x128xi32>
    %8 = arith.cmpi ne, %6, %7 : vector<8x128xi32>
    %c0_i32_3 = arith.constant 0 : i32
    %9 = vector.broadcast %c0_i32_3 : i32 to vector<8x128xi32>
    %10 = arith.cmpi slt, %6, %9 : vector<8x128xi32>
    %c0_i32_4 = arith.constant 0 : i32
    %11 = arith.cmpi slt, %4, %c0_i32_4 : i32
    %12 = vector.broadcast %11 : i1 to vector<8x128xi1>
    %13 = vector.broadcast %12 : vector<8x128xi1> to vector<8x128xi1>
    %14 = arith.xori %10, %13 : vector<8x128xi1>
    %15 = arith.andi %14, %8 : vector<8x128xi1>
    %16 = vector.broadcast %4 : i32 to vector<8x128xi32>
    %17 = arith.addi %6, %16 : vector<8x128xi32>
    %18 = arith.select %15, %17, %6 : vector<8x128xi1>, vector<8x128xi32>
    %c0_i32_5 = arith.constant 0 : i32
    %19 = vector.broadcast %c0_i32_5 : i32 to vector<8x128xi32>
    %20 = arith.cmpi ne, %18, %19 : vector<8x128xi32>
    %c7_i32 = arith.constant 7 : i32
    %21 = vector.broadcast %c7_i32 : i32 to vector<8x128xi32>
    %22 = arith.cmpi ne, %18, %21 : vector<8x128xi32>
    %c1_i32_6 = arith.constant 1 : i32
    %23 = tpu.dynamic_rotate %1 by %c1_i32_6 dim 0 : vector<8x128xf32>, i32 -> vector<8x128xf32>
    %cst = arith.constant 0.000000e+00 : f32
    %24 = vector.broadcast %cst : f32 to vector<8x128xf32>
    %25 = arith.select %20, %23, %24 : vector<8x128xi1>, vector<8x128xf32>
    %c7_i32_7 = arith.constant 7 : i32
    %26 = tpu.dynamic_rotate %1 by %c7_i32_7 dim 0 : vector<8x128xf32>, i32 -> vector<8x128xf32>
    %cst_8 = arith.constant 0.000000e+00 : f32
    %27 = vector.broadcast %cst_8 : f32 to vector<8x128xf32>
    %28 = arith.select %22, %26, %27 : vector<8x128xi1>, vector<8x128xf32>
    %29 = tpu.concatenate %25, %1, %28 in 1 : vector<8x128xf32>, vector<8x128xf32>, vector<8x128xf32> -> vector<8x384xf32>
    %30 = arith.truncf %29 : vector<8x384xf32> to vector<8x384xbf16>
    %c0_9 = arith.constant 0 : index
    %c0_10 = arith.constant 0 : index
    %31 = vector.load %arg2[%c0_9, %c0_10] : memref<384x128xbf16, #tpu.memory_space<vmem>>, vector<384x128xbf16>
    %cst_11 = arith.constant dense<0.000000e+00> : vector<8x128xf32>
    %32 = tpu.matmul %30, %31, %cst_11 {dimension_numbers = #tpu.dot_dimension_numbers<[1], [0], [0], [1], [0, 0, 1, 1], [], []>} : vector<8x384xbf16>, vector<384x128xbf16>, vector<8x128xf32> -> vector<8x128xf32>
    %c0_12 = arith.constant 0 : index
    %c0_13 = arith.constant 0 : index
    %33 = vector.load %arg3[%c0_12, %c0_13] : memref<1x128xf32, #tpu.memory_space<vmem>>, vector<1x128xf32>
    %34 = vector.broadcast %33 : vector<1x128xf32> to vector<8x128xf32>
    %35 = arith.addf %32, %34 : vector<8x128xf32>
    %cst_14 = arith.constant 0.000000e+00 : f32
    %36 = vector.broadcast %cst_14 : f32 to vector<8x128xf32>
    %37 = arith.maximumf %35, %36 : vector<8x128xf32>
    %c1_i32_15 = arith.constant 1 : i32
    %38 = tpu.dynamic_rotate %37 by %c1_i32_15 dim 0 : vector<8x128xf32>, i32 -> vector<8x128xf32>
    %cst_16 = arith.constant 0.000000e+00 : f32
    %39 = vector.broadcast %cst_16 : f32 to vector<8x128xf32>
    %40 = arith.select %20, %38, %39 : vector<8x128xi1>, vector<8x128xf32>
    %c7_i32_17 = arith.constant 7 : i32
    %41 = tpu.dynamic_rotate %37 by %c7_i32_17 dim 0 : vector<8x128xf32>, i32 -> vector<8x128xf32>
    %cst_18 = arith.constant 0.000000e+00 : f32
    %42 = vector.broadcast %cst_18 : f32 to vector<8x128xf32>
    %43 = arith.select %22, %41, %42 : vector<8x128xi1>, vector<8x128xf32>
    %44 = tpu.concatenate %40, %37, %43 in 1 : vector<8x128xf32>, vector<8x128xf32>, vector<8x128xf32> -> vector<8x384xf32>
    %45 = arith.truncf %44 : vector<8x384xf32> to vector<8x384xbf16>
    %c0_19 = arith.constant 0 : index
    %c0_20 = arith.constant 0 : index
    %46 = vector.load %arg4[%c0_19, %c0_20] : memref<384x128xbf16, #tpu.memory_space<vmem>>, vector<384x128xbf16>
    %cst_21 = arith.constant dense<0.000000e+00> : vector<8x128xf32>
    %47 = tpu.matmul %45, %46, %cst_21 {dimension_numbers = #tpu.dot_dimension_numbers<[1], [0], [0], [1], [0, 0, 1, 1], [], []>} : vector<8x384xbf16>, vector<384x128xbf16>, vector<8x128xf32> -> vector<8x128xf32>
    %c0_22 = arith.constant 0 : index
    %c0_23 = arith.constant 0 : index
    %48 = vector.load %arg5[%c0_22, %c0_23] : memref<1x128xf32, #tpu.memory_space<vmem>>, vector<1x128xf32>
    %49 = vector.broadcast %48 : vector<1x128xf32> to vector<8x128xf32>
    %50 = arith.addf %47, %49 : vector<8x128xf32>
    %51 = arith.addf %50, %1 : vector<8x128xf32>
    %cst_24 = arith.constant 0.000000e+00 : f32
    %52 = vector.broadcast %cst_24 : f32 to vector<8x128xf32>
    %53 = arith.maximumf %51, %52 : vector<8x128xf32>
    %54 = vector.shape_cast %53 : vector<8x128xf32> to vector<1x8x128xf32>
    %c0_25 = arith.constant 0 : index
    %c0_26 = arith.constant 0 : index
    %c0_27 = arith.constant 0 : index
    %55 = vector.load %arg6[%c0_25, %c0_26, %c0_27] : memref<1x8x128xf32, #tpu.memory_space<vmem>>, vector<1x8x128xf32>
    tpu.vector_store %arg6[%c0_25, %c0_26, %c0_27], %54 {strides = array<i32>} : memref<1x8x128xf32, #tpu.memory_space<vmem>>, vector<1x8x128xf32>,
    return
  }
  func.func @transform_0(%arg0: i32) -> (i32, i32, i32) {
    %c0_i32 = arith.constant 0 : i32
    %c0_i32_0 = arith.constant 0 : i32
    %c0_i32_1 = arith.constant 0 : i32
    return %arg0, %c0_i32, %c0_i32_0 : i32, i32, i32
  }
  func.func @transform_1(%arg0: i32) -> (i32, i32) {
    %c0_i32 = arith.constant 0 : i32
    %c0_i32_0 = arith.constant 0 : i32
    %c0_i32_1 = arith.constant 0 : i32
    return %c0_i32, %c0_i32_0 : i32, i32
  }
  func.func @transform_2(%arg0: i32) -> (i32, i32) {
    %c0_i32 = arith.constant 0 : i32
    %c0_i32_0 = arith.constant 0 : i32
    %c0_i32_1 = arith.constant 0 : i32
    return %c0_i32, %c0_i32_0 : i32, i32
  }
  func.func @transform_3(%arg0: i32) -> (i32, i32) {
    %c0_i32 = arith.constant 0 : i32
    %c0_i32_0 = arith.constant 0 : i32
    %c0_i32_1 = arith.constant 0 : i32
    return %c0_i32, %c0_i32_0 : i32, i32
  }
  func.func @transform_4(%arg0: i32) -> (i32, i32) {
    %c0_i32 = arith.constant 0 : i32
    %c0_i32_0 = arith.constant 0 : i32
    %c0_i32_1 = arith.constant 0 : i32
    return %c0_i32, %c0_i32_0 : i32, i32
  }
  func.func @transform_5(%arg0: i32) -> (i32, i32, i32) {
    %c0_i32 = arith.constant 0 : i32
    %c0_i32_0 = arith.constant 0 : i32
    %c0_i32_1 = arith.constant 0 : i32
    return %arg0, %c0_i32, %c0_i32_0 : i32, i32, i32
  }
}

</mosaic_0001>

<bundles_post_ra>
// kernel: residual_block_nchw.1
= control target key start
LH: loop header
LB: loop body
LE: loop exit
PB: predicated region body
PF: predicated region fallthrough
CT: control target
= control target key end

     0   :  { %s1138_s18 = smov 0   ;;  %s1377_s0 = inlined_call_operand.vmem [shape: f32[2,8,128], index: 0, kind: input, shape index: {}]   ;;  %s1378_s1 = inlined_call_operand.vmem [shape: bf16[384,128], index: 1, kind: input, shape index: {}]   ;;  %s1379_s2 = inlined_call_operand.vmem [shape: f32[1,128], index: 2, kind: input, shape index: {}]   ;;  %s1380_s3 = inlined_call_operand.vmem [shape: bf16[384,128], index: 3, kind: input, shape index: {}]   ;;  %s1381_s4 = inlined_call_operand.vmem [shape: f32[1,128], index: 4, kind: input, shape index: {}]   ;;  %s1382_s5 = inlined_call_operand.vmem [shape: f32[2,8,128], index: 5, kind: output, shape index: {}]  }
   0x1 LB: > { %s867_s19 = sadd.s32 4294967295, %s1104_s18   ;;  %p871_p0 = scmp.ge.s32.totalorder %s1104_s18, 1  ;;  %s1104_s18 = sphi %s1138_s18, %s15_s18  }
   0x2   : > { %p186_p1 = scmp.lt.s32.totalorder %s1104_s18, 3 }
   0x4   : > { %p187_p2 = pnand %p871_p0, %p186_p1 }
   0x5   : > { %v1050_v0 = vld [vmem:[%s1378_s1 + $0x40] sm:$0xff] (!%p187_p2)   ;;  %v1106_v2 = vmov (!%p187_p2), 0.0   ;;  %v1053_v4 = vld [vmem:[%s1378_s1 + $0x48] sm:$0xff] (!%p187_p2)   ;;  %v1056_v7 = vld [vmem:[%s1378_s1 + $0x50] sm:$0xff] (!%p187_p2)   ;;  %p212_p3 = scmp.lt.s32.totalorder (!%p187_p2), %s867_s19, 1  ;;  %vm1107_vm0 = vmmov (!%p187_p2), 0   ;;  %v222_v14 = vlaneseq (!%p187_p2) }
   0x6   : > { %190 = sbr.rel (%p187_p2) target bundleno = 487 (0x1e7), region = 40  ;;  %v1051_v1 = vld [vmem:[%s1378_s1] sm:$0xff] (!%p187_p2)   ;;  %1000 = vmatprep.subr.bf16.mxu1 (!%p187_p2), %v1106_v2  ;;  %938 = vmatprep.subr.bf16.mxu0 (!%p187_p2), %v1050_v0  ;;  %v1054_v5 = vld [vmem:[%s1378_s1 + $0x8] sm:$0xff] (!%p187_p2)   ;;  %v1057_v8 = vld [vmem:[%s1378_s1 + $0x10] sm:$0xff] (!%p187_p2)  }
   0x7   : > { %v1052_v3 = vld [vmem:[%s1378_s1 + $0x80] sm:$0xff] (!%p187_p2)   ;;  %939 = vmatpush3.bf16.msra.mxu0 (!%p187_p2), %v1051_v1  ;;  %v1055_v6 = vld [vmem:[%s1378_s1 + $0x88] sm:$0xff] (!%p187_p2)   ;;  %v1058_v9 = vld [vmem:[%s1378_s1 + $0x90] sm:$0xff] (!%p187_p2)   ;;  %1016 = vmatprep.mubr.msk.bf16.mxu1 (!%p187_p2), %vm1107_vm0, %v1106_v2  ;;  %v223_v18 = vshrl.u32 (!%p187_p2), %v222_v14, 7 }
   0x8   : > { %1001 = vmatpush3.bf16.msra.mxu1 (!%p187_p2), %v1052_v3  ;;  %940 = vmatprep.subr.bf16.mxu0 (!%p187_p2), %v1053_v4  ;;  %v1059_v10 = vld [vmem:[%s1378_s1 + $0x58] sm:$0xff] (!%p187_p2)   ;;  %v1062_v13 = vld [vmem:[%s1378_s1 + $0x60] sm:$0xff] (!%p187_p2)   ;;  %v1065_v17 = vld [vmem:[%s1378_s1 + $0x68] sm:$0xff] (!%p187_p2)  }
   0x9   : > { %1002 = vmatprep.subr.bf16.mxu1 (!%p187_p2), %v1106_v2  ;;  %v1060_v11 = vld [vmem:[%s1378_s1 + $0x18] sm:$0xff] (!%p187_p2)   ;;  %v1063_v15 = vld [vmem:[%s1378_s1 + $0x20] sm:$0xff] (!%p187_p2)   ;;  %v1066_v19 = vld [vmem:[%s1378_s1 + $0x28] sm:$0xff] (!%p187_p2)   ;;  %v228_v22 = vand.u32 (!%p187_p2), 7, %v223_v18 }
   0xa   : > { %v1061_v12 = vld [vmem:[%s1378_s1 + $0x98] sm:$0xff] (!%p187_p2)   ;;  %v1064_v16 = vld [vmem:[%s1378_s1 + $0xa0] sm:$0xff] (!%p187_p2)   ;;  %v1067_v20 = vld [vmem:[%s1378_s1 + $0xa8] sm:$0xff] (!%p187_p2)  }
   0xb   : > { %941 = vmatpush3.bf16.msra.mxu0 (!%p187_p2), %v1054_v5  ;;  %v1068_v21 = vld [vmem:[%s1378_s1 + $0x70] sm:$0xff] (!%p187_p2)   ;;  %v1071_v26 = vld [vmem:[%s1378_s1 + $0x78] sm:$0xff] (!%p187_p2)   ;;  %vm1236_vm1 = vcmp.ne.s32.totalorder (!%p187_p2), %v228_v22, 0  ;;  %vm1244_vm2 = vcmp.ne.s32.totalorder (!%p187_p2), %v228_v22, 7  ;;  %v1074_v34 = vld [vmem:[%s1380_s3 + $0x40] sm:$0xff] (!%p187_p2)  }
   0xc   : > { %1003 = vmatpush3.bf16.msra.mxu1 (!%p187_p2), %v1055_v6  ;;  %942 = vmatprep.subr.bf16.mxu0 (!%p187_p2), %v1056_v7  ;;  %v1069_v23 = vld [vmem:[%s1378_s1 + $0x30] sm:$0xff] (!%p187_p2)   ;;  %v1072_v29 = vld [vmem:[%s1378_s1 + $0x38] sm:$0xff] (!%p187_p2)   ;;  %vm899_vm3 = vmpackc.low (!%p187_p2), %vm1236_vm1, %vm1236_vm1 }
   0xd   : > { %1004 = vmatprep.subr.bf16.mxu1 %v1106_v2  ;;  %s1388_s19 = smov (!%p212_p3, %s867_s19), 1  ;;  %v1070_v25 = vld [vmem:[%s1378_s1 + $0xb0] sm:$0xff]   ;;  %v1073_v31 = vld [vmem:[%s1378_s1 + $0xb8] sm:$0xff]   ;;  %vm902_vm4 = vmpackc.low %vm1244_vm2, %vm1244_vm2 }
   0xe   : > { %s872_s29 = sshll.u32 %s1388_s19, 3  ;;  %v1075_v36 = vld [vmem:[%s1380_s3] sm:$0xff]   ;;  %v1077_v39 = vld [vmem:[%s1380_s3 + $0x48] sm:$0xff]   ;;  %v1080_v42 = vld [vmem:[%s1380_s3 + $0x50] sm:$0xff]  }
   0xf   : > { %943 = vmatpush3.bf16.msra.mxu0 %v1057_v8  ;;  %s215_s13 = scalar_lea.vmem %s1377_s0, %s872_s29  ;;  %v1076_v38 = vld [vmem:[%s1380_s3 + $0x80] sm:$0xff]   ;;  %v1078_v40 = vld [vmem:[%s1380_s3 + $0x8] sm:$0xff]   ;;  %v1081_v43 = vld [vmem:[%s1380_s3 + $0x10] sm:$0xff]   ;;  %s219_s12 = scalar_lea.vmem %s1382_s5, %s872_s29 }
  0x10   : > { %1005 = vmatpush3.bf16.msra.mxu1 %v1058_v9  ;;  %944 = vmatprep.subr.bf16.mxu0 %v1059_v10  ;;  %v1226_v24 = vld [vmem:[%s215_s13] sm:$0xff]  ;;  %v1079_v41 = vld [vmem:[%s1380_s3 + $0x88] sm:$0xff]   ;;  %v1082_v44 = vld [vmem:[%s1380_s3 + $0x90] sm:$0xff]  }
  0x11   : > { %1006 = vmatprep.subr.bf16.mxu1 %v1106_v2  ;;  %v243_v27 = vpack.c.bf16 %v1226_v24, %v1226_v24  ;;  %v238_v32 = vrot.slane %v1226_v24, 7  ;;  %v240_v33 = vrot.slane %v1226_v24, 1  ;;  %v1083_v45 = vld [vmem:[%s1380_s3 + $0x58] sm:$0xff]   ;;  %v1086_v48 = vld [vmem:[%s1380_s3 + $0x60] sm:$0xff]   ;;  %v1089_v51 = vld [vmem:[%s1380_s3 + $0x68] sm:$0xff]  }
  0x12   : > { %v1084_v46 = vld [vmem:[%s1380_s3 + $0x18] sm:$0xff]   ;;  %v1087_v49 = vld [vmem:[%s1380_s3 + $0x20] sm:$0xff]   ;;  %v1090_v52 = vld [vmem:[%s1380_s3 + $0x28] sm:$0xff]  }
  0x13   : > { %945 = vmatpush3.bf16.msra.mxu0 %v1060_v11  ;;  %476 = vmatprep.mubr.bf16.mxu0 %v243_v27  ;;  %v900_v35 = vpack.c.bf16 %v238_v32, %v238_v32  ;;  %v903_v37 = vpack.c.bf16 %v240_v33, %v240_v33  ;;  %v1085_v47 = vld [vmem:[%s1380_s3 + $0x98] sm:$0xff]   ;;  %v1088_v50 = vld [vmem:[%s1380_s3 + $0xa0] sm:$0xff]   ;;  %v1091_v53 = vld [vmem:[%s1380_s3 + $0xa8] sm:$0xff]  }
  0x14   : > { %1007 = vmatpush3.bf16.msra.mxu1 %v1061_v12  ;;  %946 = vmatprep.subr.bf16.mxu0 %v1062_v13  ;;  %v1092_v54 = vld [vmem:[%s1380_s3 + $0x70] sm:$0xff]   ;;  %v1095_v57 = vld [vmem:[%s1380_s3 + $0x78] sm:$0xff]   ;;  %v874_v62 = vld [vmem:[%s1379_s2] ss:$0 sm:$0xff] }
  0x15   : > { %1008 = vmatprep.subr.bf16.mxu1 %v1106_v2  ;;  %v1093_v55 = vld [vmem:[%s1380_s3 + $0x30] sm:$0xff]   ;;  %v1096_v58 = vld [vmem:[%s1380_s3 + $0x38] sm:$0xff]  }
  0x16   : > { %v1094_v56 = vld [vmem:[%s1380_s3 + $0xb0] sm:$0xff]   ;;  %v1097_v59 = vld [vmem:[%s1380_s3 + $0xb8] sm:$0xff]  }
  0x17   : > { %947 = vmatpush3.bf16.msra.mxu0 %v1063_v15 }
  0x18   : > { %1009 = vmatpush3.bf16.msra.mxu1 %v1064_v16  ;;  %948 = vmatprep.subr.bf16.mxu0 %v1065_v17  ;;  %v905_v16 = vld [vmem:[%s1381_s4] ss:$0 sm:$0xff] }
  0x19   : > { %1010 = vmatprep.subr.bf16.mxu1 %v1106_v2 }
  0x1b   : > { %949 = vmatpush3.bf16.msra.mxu0 %v1066_v19 }
  0x1c   : > { %1011 = vmatpush3.bf16.msra.mxu1 %v1067_v20  ;;  %950 = vmatprep.subr.bf16.mxu0 %v1068_v21 }
  0x1d   : > { %1012 = vmatprep.subr.bf16.mxu1 %v1106_v2 }
  0x1f   : > { %951 = vmatpush3.bf16.msra.mxu0 %v1069_v23 }
  0x20   : > { %1013 = vmatpush3.bf16.msra.mxu1 %v1070_v25  ;;  %952 = vmatprep.subr.bf16.mxu0 %v1071_v26 }
  0x21   : > { %1014 = vmatprep.subr.bf16.mxu1 %v1106_v2 }
  0x23   : > { %953 = vmatpush3.bf16.msra.mxu0 %v1072_v29 }
  0x24   : > { %1015 = vmatpush3.bf16.msra.mxu1 %v1073_v31  ;;  %969 = vmatprep.subr.bf16.mxu0 %v1074_v34 }
  0x25   : > { %1020 = vmatprep.subr.bf16.mxu1 %v1106_v2 }
  0x26   : > { %901 = vmatmul.mubr.msk.bf16.vlgmr.msra.gmra.mrb[0].mxu0 %vm899_vm3, %v900_v35 }
  0x27   : > { %1017 = vmatmul.mubr.msk.bf16.vlgmr.msra.gmra.mrb[0].mxu1 %vm902_vm4, %v903_v37  ;;  %970 = vmatpush3.bf16.msra.mxu0 %v1075_v36 }
  0x28   : > { %1021 = vmatpush3.bf16.msra.mxu1 %v1076_v38  ;;  %971 = vmatprep.subr.bf16.mxu0 %v1077_v39 }
  0x29   : > { %1022 = vmatprep.subr.bf16.mxu1 %v1106_v2  ;;  %1036 = vmatprep.mubr.msk.bf16.mxu1 %vm1107_vm0, %v1106_v2 }
  0x2b   : > { %972 = vmatpush3.bf16.msra.mxu0 %v1078_v40 }
  0x2c   : > { %1023 = vmatpush3.bf16.msra.mxu1 %v1079_v41  ;;  %973 = vmatprep.subr.bf16.mxu0 %v1080_v42 }
  0x2d   : > { %1024 = vmatprep.subr.bf16.mxu1 %v1106_v2 }
  0x2f   : > { %974 = vmatpush3.bf16.msra.mxu0 %v1081_v43 }
  0x30   : > { %1025 = vmatpush3.bf16.msra.mxu1 %v1082_v44  ;;  %975 = vmatprep.subr.bf16.mxu0 %v1083_v45 }
  0x31   : > { %1026 = vmatprep.subr.bf16.mxu1 %v1106_v2 }
  0x33   : > { %976 = vmatpush3.bf16.msra.mxu0 %v1084_v46 }
  0x34   : > { %1027 = vmatpush3.bf16.msra.mxu1 %v1085_v47  ;;  %977 = vmatprep.subr.bf16.mxu0 %v1086_v48 }
  0x35   : > { %1028 = vmatprep.subr.bf16.mxu1 %v1106_v2 }
  0x37   : > { %978 = vmatpush3.bf16.msra.mxu0 %v1087_v49 }
  0x38   : > { %1029 = vmatpush3.bf16.msra.mxu1 %v1088_v50  ;;  %979 = vmatprep.subr.bf16.mxu0 %v1089_v51 }
  0x39   : > { %1030 = vmatprep.subr.bf16.mxu1 %v1106_v2 }
  0x3b   : > { %980 = vmatpush3.bf16.msra.mxu0 %v1090_v52 }
  0x3c   : > { %1031 = vmatpush3.bf16.msra.mxu1 %v1091_v53  ;;  %981 = vmatprep.subr.bf16.mxu0 %v1092_v54 }
  0x3d   : > { %1032 = vmatprep.subr.bf16.mxu1 %v1106_v2 }
  0x3f   : > { %982 = vmatpush3.bf16.msra.mxu0 %v1093_v55 }
  0x40   : > { %1033 = vmatpush3.bf16.msra.mxu1 %v1094_v56  ;;  %983 = vmatprep.subr.bf16.mxu0 %v1095_v57 }
  0x41   : > { %1034 = vmatprep.subr.bf16.mxu1 %v1106_v2 }
  0x43   : > { %984 = vmatpush3.bf16.msra.mxu0 %v1096_v58 }
  0x44   : > { %1035 = vmatpush3.bf16.msra.mxu1 %v1097_v59 }
  0xf9   : > { %v954_v60 = vpop.f32.mrb[0].mxu0 }
  0xfa   : > { %v955_v61 = vpop.f32.mrb[1].mxu0  ;;  %v518_v63 = vpop.f32.mrb[0].mxu1 }
  0xfb   : > { %v956_v0 = vadd.f32 %v955_v61, %v954_v60  ;;  %v957_v1 = vpop.f32.mrb[2].mxu0  ;;  %v1018_v2 = vpop.f32.mrb[1].mxu1 }
  0xfc   : > { %v958_v3 = vpop.f32.mrb[3].mxu0  ;;  %v521_v4 = vpop.f32.mrb[2].mxu1 }
  0xfd   : > { %v479_v5 = vadd.f32 %v956_v0, %v874_v62  ;;  %v1019_v6 = vpop.f32.mrb[3].mxu1 }
  0xff   : > { %v519_v7 = vadd.f32 %v518_v63, %v479_v5 }
 0x101   : > { %v524_v8 = vmax.f32 %v519_v7, 0.0 }
 0x103   : > { %v525_v9 = vrot.slane %v524_v8, 7  ;;  %v527_v10 = vrot.slane %v524_v8, 1  ;;  %v530_v11 = vpack.c.bf16 %v524_v8, %v524_v8 }
 0x105   : > { %v931_v12 = vpack.c.bf16 %v525_v9, %v525_v9  ;;  %v934_v13 = vpack.c.bf16 %v527_v10, %v527_v10  ;;  %763 = vmatprep.mubr.bf16.mxu0 %v530_v11 }
 0x107   : > { %932 = vmatmul.mubr.msk.bf16.vlgmr.msra.gmra.mrb[4].mxu0 %vm899_vm3, %v931_v12  ;;  %1037 = vmatmul.mubr.msk.bf16.vlgmr.msra.gmra.mrb[4].mxu1 %vm902_vm4, %v934_v13 }
 0x1da   : > { %v985_v14 = vpop.f32.mrb[4].mxu0  ;;  %v805_v15 = vpop.f32.mrb[4].mxu1 }
 0x1db   : > { %v986_v17 = vpop.f32.mrb[5].mxu0  ;;  %v1038_v18 = vpop.f32.mrb[5].mxu1 }
 0x1dc   : > { %v987_v19 = vadd.f32 %v986_v17, %v985_v14  ;;  %v988_v20 = vpop.f32.mrb[6].mxu0  ;;  %v808_v21 = vpop.f32.mrb[6].mxu1 }
 0x1dd   : > { %v989_v22 = vpop.f32.mrb[7].mxu0  ;;  %v1039_v23 = vpop.f32.mrb[7].mxu1 }
 0x1de   : > { %v766_v25 = vadd.f32 %v987_v19, %v905_v16 }
 0x1e0   : > { %v806_v26 = vadd.f32 %v805_v15, %v766_v25 }
 0x1e2   : > { %v811_v27 = vadd.f32 %v806_v26, %v1226_v24 }
 0x1e4   : > { %v812_v28 = vmax.f32 %v811_v27, 0.0 }
 0x1e6   : > { %813 = vst [vmem:[%s219_s12] sm:$0xff] %v812_v28 }
 0x1e7 PF: > { %s15_s18 = sadd.s32 1, %s1104_s18  }
 0x1e8   : > { %p12_p4 = scmp.ge.s32.totalorder %s15_s18, 4  }
 0x1ea   :  { %14 = sbr.rel (!%p12_p4) target bundleno = 1 (0x1), region = 70 }

// kernel: residual_block_nchw.1
= control target key start
LH: loop header
LB: loop body
LE: loop exit
PB: predicated region body
PF: predicated region fallthrough
CT: control target
= control target key end

     0   :  { %s1138_s18 = smov 0   ;;  %s1377_s0 = inlined_call_operand.vmem [shape: f32[2,8,128], index: 0, kind: input, shape index: {}]   ;;  %s1378_s1 = inlined_call_operand.vmem [shape: bf16[384,128], index: 1, kind: input, shape index: {}]   ;;  %s1379_s2 = inlined_call_operand.vmem [shape: f32[1,128], index: 2, kind: input, shape index: {}]   ;;  %s1380_s3 = inlined_call_operand.vmem [shape: bf16[384,128], index: 3, kind: input, shape index: {}]   ;;  %s1381_s4 = inlined_call_operand.vmem [shape: f32[1,128], index: 4, kind: input, shape index: {}]   ;;  %s1382_s5 = inlined_call_operand.vmem [shape: f32[2,8,128], index: 5, kind: output, shape index: {}]  }
   0x1 LB: > { %s867_s19 = sadd.s32 4294967295, %s1104_s18   ;;  %p871_p0 = scmp.ge.s32.totalorder %s1104_s18, 1  ;;  %s1104_s18 = sphi %s1138_s18, %s15_s18  }
   0x2   : > { %p186_p1 = scmp.lt.s32.totalorder %s1104_s18, 3 }
   0x4   : > { %p187_p2 = pnand %p871_p0, %p186_p1 }
   0x5   : > { %v1050_v0 = vld [vmem:[%s1378_s1 + $0x40] sm:$0xff] (!%p187_p2)   ;;  %v1106_v2 = vmov (!%p187_p2), 0.0   ;;  %v1053_v4 = vld [vmem:[%s1378_s1 + $0x48] sm:$0xff] (!%p187_p2)   ;;  %v1056_v7 = vld [vmem:[%s1378_s1 + $0x50] sm:$0xff] (!%p187_p2)   ;;  %p212_p3 = scmp.lt.s32.totalorder (!%p187_p2), %s867_s19, 1  ;;  %vm1107_vm0 = vmmov (!%p187_p2), 0   ;;  %v222_v14 = vlaneseq (!%p187_p2) }
   0x6   : > { %190 = sbr.rel (%p187_p2) target bundleno = 487 (0x1e7), region = 40  ;;  %v1051_v1 = vld [vmem:[%s1378_s1] sm:$0xff] (!%p187_p2)   ;;  %1000 = vmatprep.subr.bf16.mxu1 (!%p187_p2), %v1106_v2  ;;  %938 = vmatprep.subr.bf16.mxu0 (!%p187_p2), %v1050_v0  ;;  %v1054_v5 = vld [vmem:[%s1378_s1 + $0x8] sm:$0xff] (!%p187_p2)   ;;  %v1057_v8 = vld [vmem:[%s1378_s1 + $0x10] sm:$0xff] (!%p187_p2)  }
   0x7   : > { %v1052_v3 = vld [vmem:[%s1378_s1 + $0x80] sm:$0xff] (!%p187_p2)   ;;  %939 = vmatpush3.bf16.msra.mxu0 (!%p187_p2), %v1051_v1  ;;  %v1055_v6 = vld [vmem:[%s1378_s1 + $0x88] sm:$0xff] (!%p187_p2)   ;;  %v1058_v9 = vld [vmem:[%s1378_s1 + $0x90] sm:$0xff] (!%p187_p2)   ;;  %1016 = vmatprep.mubr.msk.bf16.mxu1 (!%p187_p2), %vm1107_vm0, %v1106_v2  ;;  %v223_v18 = vshrl.u32 (!%p187_p2), %v222_v14, 7 }
   0x8   : > { %1001 = vmatpush3.bf16.msra.mxu1 (!%p187_p2), %v1052_v3  ;;  %940 = vmatprep.subr.bf16.mxu0 (!%p187_p2), %v1053_v4  ;;  %v1059_v10 = vld [vmem:[%s1378_s1 + $0x58] sm:$0xff] (!%p187_p2)   ;;  %v1062_v13 = vld [vmem:[%s1378_s1 + $0x60] sm:$0xff] (!%p187_p2)   ;;  %v1065_v17 = vld [vmem:[%s1378_s1 + $0x68] sm:$0xff] (!%p187_p2)  }
   0x9   : > { %1002 = vmatprep.subr.bf16.mxu1 (!%p187_p2), %v1106_v2  ;;  %v1060_v11 = vld [vmem:[%s1378_s1 + $0x18] sm:$0xff] (!%p187_p2)   ;;  %v1063_v15 = vld [vmem:[%s1378_s1 + $0x20] sm:$0xff] (!%p187_p2)   ;;  %v1066_v19 = vld [vmem:[%s1378_s1 + $0x28] sm:$0xff] (!%p187_p2)   ;;  %v228_v22 = vand.u32 (!%p187_p2), 7, %v223_v18 }
   0xa   : > { %v1061_v12 = vld [vmem:[%s1378_s1 + $0x98] sm:$0xff] (!%p187_p2)   ;;  %v1064_v16 = vld [vmem:[%s1378_s1 + $0xa0] sm:$0xff] (!%p187_p2)   ;;  %v1067_v20 = vld [vmem:[%s1378_s1 + $0xa8] sm:$0xff] (!%p187_p2)  }
   0xb   : > { %941 = vmatpush3.bf16.msra.mxu0 (!%p187_p2), %v1054_v5  ;;  %v1068_v21 = vld [vmem:[%s1378_s1 + $0x70] sm:$0xff] (!%p187_p2)   ;;  %v1071_v26 = vld [vmem:[%s1378_s1 + $0x78] sm:$0xff] (!%p187_p2)   ;;  %vm1236_vm1 = vcmp.ne.s32.totalorder (!%p187_p2), %v228_v22, 0  ;;  %vm1244_vm2 = vcmp.ne.s32.totalorder (!%p187_p2), %v228_v22, 7  ;;  %v1074_v34 = vld [vmem:[%s1380_s3 + $0x40] sm:$0xff] (!%p187_p2)  }
   0xc   : > { %1003 = vmatpush3.bf16.msra.mxu1 (!%p187_p2), %v1055_v6  ;;  %942 = vmatprep.subr.bf16.mxu0 (!%p187_p2), %v1056_v7  ;;  %v1069_v23 = vld [vmem:[%s1378_s1 + $0x30] sm:$0xff] (!%p187_p2)   ;;  %v1072_v29 = vld [vmem:[%s1378_s1 + $0x38] sm:$0xff] (!%p187_p2)   ;;  %vm899_vm3 = vmpackc.low (!%p187_p2), %vm1236_vm1, %vm1236_vm1 }
   0xd   : > { %1004 = vmatprep.subr.bf16.mxu1 %v1106_v2  ;;  %s1388_s19 = smov (!%p212_p3, %s867_s19), 1  ;;  %v1070_v25 = vld [vmem:[%s1378_s1 + $0xb0] sm:$0xff]   ;;  %v1073_v31 = vld [vmem:[%s1378_s1 + $0xb8] sm:$0xff]   ;;  %vm902_vm4 = vmpackc.low %vm1244_vm2, %vm1244_vm2 }
   0xe   : > { %s872_s29 = sshll.u32 %s1388_s19, 3  ;;  %v1075_v36 = vld [vmem:[%s1380_s3] sm:$0xff]   ;;  %v1077_v39 = vld [vmem:[%s1380_s3 + $0x48] sm:$0xff]   ;;  %v1080_v42 = vld [vmem:[%s1380_s3 + $0x50] sm:$0xff]  }
   0xf   : > { %943 = vmatpush3.bf16.msra.mxu0 %v1057_v8  ;;  %s215_s13 = scalar_lea.vmem %s1377_s0, %s872_s29  ;;  %v1076_v38 = vld [vmem:[%s1380_s3 + $0x80] sm:$0xff]   ;;  %v1078_v40 = vld [vmem:[%s1380_s3 + $0x8] sm:$0xff]   ;;  %v1081_v43 = vld [vmem:[%s1380_s3 + $0x10] sm:$0xff]   ;;  %s219_s12 = scalar_lea.vmem %s1382_s5, %s872_s29 }
  0x10   : > { %1005 = vmatpush3.bf16.msra.mxu1 %v1058_v9  ;;  %944 = vmatprep.subr.bf16.mxu0 %v1059_v10  ;;  %v1226_v24 = vld [vmem:[%s215_s13] sm:$0xff]  ;;  %v1079_v41 = vld [vmem:[%s1380_s3 + $0x88] sm:$0xff]   ;;  %v1082_v44 = vld [vmem:[%s1380_s3 + $0x90] sm:$0xff]  }
  0x11   : > { %1006 = vmatprep.subr.bf16.mxu1 %v1106_v2  ;;  %v243_v27 = vpack.c.bf16 %v1226_v24, %v1226_v24  ;;  %v238_v32 = vrot.slane %v1226_v24, 7  ;;  %v240_v33 = vrot.slane %v1226_v24, 1  ;;  %v1083_v45 = vld [vmem:[%s1380_s3 + $0x58] sm:$0xff]   ;;  %v1086_v48 = vld [vmem:[%s1380_s3 + $0x60] sm:$0xff]   ;;  %v1089_v51 = vld [vmem:[%s1380_s3 + $0x68] sm:$0xff]  }
  0x12   : > { %v1084_v46 = vld [vmem:[%s1380_s3 + $0x18] sm:$0xff]   ;;  %v1087_v49 = vld [vmem:[%s1380_s3 + $0x20] sm:$0xff]   ;;  %v1090_v52 = vld [vmem:[%s1380_s3 + $0x28] sm:$0xff]  }
  0x13   : > { %945 = vmatpush3.bf16.msra.mxu0 %v1060_v11  ;;  %476 = vmatprep.mubr.bf16.mxu0 %v243_v27  ;;  %v900_v35 = vpack.c.bf16 %v238_v32, %v238_v32  ;;  %v903_v37 = vpack.c.bf16 %v240_v33, %v240_v33  ;;  %v1085_v47 = vld [vmem:[%s1380_s3 + $0x98] sm:$0xff]   ;;  %v1088_v50 = vld [vmem:[%s1380_s3 + $0xa0] sm:$0xff]   ;;  %v1091_v53 = vld [vmem:[%s1380_s3 + $0xa8] sm:$0xff]  }
  0x14   : > { %1007 = vmatpush3.bf16.msra.mxu1 %v1061_v12  ;;  %946 = vmatprep.subr.bf16.mxu0 %v1062_v13  ;;  %v1092_v54 = vld [vmem:[%s1380_s3 + $0x70] sm:$0xff]   ;;  %v1095_v57 = vld [vmem:[%s1380_s3 + $0x78] sm:$0xff]   ;;  %v874_v62 = vld [vmem:[%s1379_s2] ss:$0 sm:$0xff] }
  0x15   : > { %1008 = vmatprep.subr.bf16.mxu1 %v1106_v2  ;;  %v1093_v55 = vld [vmem:[%s1380_s3 + $0x30] sm:$0xff]   ;;  %v1096_v58 = vld [vmem:[%s1380_s3 + $0x38] sm:$0xff]  }
  0x16   : > { %v1094_v56 = vld [vmem:[%s1380_s3 + $0xb0] sm:$0xff]   ;;  %v1097_v59 = vld [vmem:[%s1380_s3 + $0xb8] sm:$0xff]  }
  0x17   : > { %947 = vmatpush3.bf16.msra.mxu0 %v1063_v15 }
  0x18   : > { %1009 = vmatpush3.bf16.msra.mxu1 %v1064_v16  ;;  %948 = vmatprep.subr.bf16.mxu0 %v1065_v17  ;;  %v905_v16 = vld [vmem:[%s1381_s4] ss:$0 sm:$0xff] }
  0x19   : > { %1010 = vmatprep.subr.bf16.mxu1 %v1106_v2 }
  0x1b   : > { %949 = vmatpush3.bf16.msra.mxu0 %v1066_v19 }
  0x1c   : > { %1011 = vmatpush3.bf16.msra.mxu1 %v1067_v20  ;;  %950 = vmatprep.subr.bf16.mxu0 %v1068_v21 }
  0x1d   : > { %1012 = vmatprep.subr.bf16.mxu1 %v1106_v2 }
  0x1f   : > { %951 = vmatpush3.bf16.msra.mxu0 %v1069_v23 }
  0x20   : > { %1013 = vmatpush3.bf16.msra.mxu1 %v1070_v25  ;;  %952 = vmatprep.subr.bf16.mxu0 %v1071_v26 }
  0x21   : > { %1014 = vmatprep.subr.bf16.mxu1 %v1106_v2 }
  0x23   : > { %953 = vmatpush3.bf16.msra.mxu0 %v1072_v29 }
  0x24   : > { %1015 = vmatpush3.bf16.msra.mxu1 %v1073_v31  ;;  %969 = vmatprep.subr.bf16.mxu0 %v1074_v34 }
  0x25   : > { %1020 = vmatprep.subr.bf16.mxu1 %v1106_v2 }
  0x26   : > { %901 = vmatmul.mubr.msk.bf16.vlgmr.msra.gmra.mrb[0].mxu0 %vm899_vm3, %v900_v35 }
  0x27   : > { %1017 = vmatmul.mubr.msk.bf16.vlgmr.msra.gmra.mrb[0].mxu1 %vm902_vm4, %v903_v37  ;;  %970 = vmatpush3.bf16.msra.mxu0 %v1075_v36 }
  0x28   : > { %1021 = vmatpush3.bf16.msra.mxu1 %v1076_v38  ;;  %971 = vmatprep.subr.bf16.mxu0 %v1077_v39 }
  0x29   : > { %1022 = vmatprep.subr.bf16.mxu1 %v1106_v2  ;;  %1036 = vmatprep.mubr.msk.bf16.mxu1 %vm1107_vm0, %v1106_v2 }
  0x2b   : > { %972 = vmatpush3.bf16.msra.mxu0 %v1078_v40 }
  0x2c   : > { %1023 = vmatpush3.bf16.msra.mxu1 %v1079_v41  ;;  %973 = vmatprep.subr.bf16.mxu0 %v1080_v42 }
  0x2d   : > { %1024 = vmatprep.subr.bf16.mxu1 %v1106_v2 }
  0x2f   : > { %974 = vmatpush3.bf16.msra.mxu0 %v1081_v43 }
  0x30   : > { %1025 = vmatpush3.bf16.msra.mxu1 %v1082_v44  ;;  %975 = vmatprep.subr.bf16.mxu0 %v1083_v45 }
  0x31   : > { %1026 = vmatprep.subr.bf16.mxu1 %v1106_v2 }
  0x33   : > { %976 = vmatpush3.bf16.msra.mxu0 %v1084_v46 }
  0x34   : > { %1027 = vmatpush3.bf16.msra.mxu1 %v1085_v47  ;;  %977 = vmatprep.subr.bf16.mxu0 %v1086_v48 }
  0x35   : > { %1028 = vmatprep.subr.bf16.mxu1 %v1106_v2 }
  0x37   : > { %978 = vmatpush3.bf16.msra.mxu0 %v1087_v49 }
  0x38   : > { %1029 = vmatpush3.bf16.msra.mxu1 %v1088_v50  ;;  %979 = vmatprep.subr.bf16.mxu0 %v1089_v51 }
  0x39   : > { %1030 = vmatprep.subr.bf16.mxu1 %v1106_v2 }
  0x3b   : > { %980 = vmatpush3.bf16.msra.mxu0 %v1090_v52 }
  0x3c   : > { %1031 = vmatpush3.bf16.msra.mxu1 %v1091_v53  ;;  %981 = vmatprep.subr.bf16.mxu0 %v1092_v54 }
  0x3d   : > { %1032 = vmatprep.subr.bf16.mxu1 %v1106_v2 }
  0x3f   : > { %982 = vmatpush3.bf16.msra.mxu0 %v1093_v55 }
  0x40   : > { %1033 = vmatpush3.bf16.msra.mxu1 %v1094_v56  ;;  %983 = vmatprep.subr.bf16.mxu0 %v1095_v57 }
  0x41   : > { %1034 = vmatprep.subr.bf16.mxu1 %v1106_v2 }
  0x43   : > { %984 = vmatpush3.bf16.msra.mxu0 %v1096_v58 }
  0x44   : > { %1035 = vmatpush3.bf16.msra.mxu1 %v1097_v59 }
  0xf9   : > { %v954_v60 = vpop.f32.mrb[0].mxu0 }
  0xfa   : > { %v955_v61 = vpop.f32.mrb[1].mxu0  ;;  %v518_v63 = vpop.f32.mrb[0].mxu1 }
  0xfb   : > { %v956_v0 = vadd.f32 %v955_v61, %v954_v60  ;;  %v957_v1 = vpop.f32.mrb[2].mxu0  ;;  %v1018_v2 = vpop.f32.mrb[1].mxu1 }
  0xfc   : > { %v958_v3 = vpop.f32.mrb[3].mxu0  ;;  %v521_v4 = vpop.f32.mrb[2].mxu1 }
  0xfd   : > { %v479_v5 = vadd.f32 %v956_v0, %v874_v62  ;;  %v1019_v6 = vpop.f32.mrb[3].mxu1 }
  0xff   : > { %v519_v7 = vadd.f32 %v518_v63, %v479_v5 }
 0x101   : > { %v524_v8 = vmax.f32 %v519_v7, 0.0 }
 0x103   : > { %v525_v9 = vrot.slane %v524_v8, 7  ;;  %v527_v10 = vrot.slane %v524_v8, 1  ;;  %v530_v11 = vpack.c.bf16 %v524_v8, %v524_v8 }
 0x105   : > { %v931_v12 = vpack.c.bf16 %v525_v9, %v525_v9  ;;  %v934_v13 = vpack.c.bf16 %v527_v10, %v527_v10  ;;  %763 = vmatprep.mubr.bf16.mxu0 %v530_v11 }
 0x107   : > { %932 = vmatmul.mubr.msk.bf16.vlgmr.msra.gmra.mrb[4].mxu0 %vm899_vm3, %v931_v12  ;;  %1037 = vmatmul.mubr.msk.bf16.vlgmr.msra.gmra.mrb[4].mxu1 %vm902_vm4, %v934_v13 }
 0x1da   : > { %v985_v14 = vpop.f32.mrb[4].mxu0  ;;  %v805_v15 = vpop.f32.mrb[4].mxu1 }
 0x1db   : > { %v986_v17 = vpop.f32.mrb[5].mxu0  ;;  %v1038_v18 = vpop.f32.mrb[5].mxu1 }
 0x1dc   : > { %v987_v19 = vadd.f32 %v986_v17, %v985_v14  ;;  %v988_v20 = vpop.f32.mrb[6].mxu0  ;;  %v808_v21 = vpop.f32.mrb[6].mxu1 }
 0x1dd   : > { %v989_v22 = vpop.f32.mrb[7].mxu0  ;;  %v1039_v23 = vpop.f32.mrb[7].mxu1 }
 0x1de   : > { %v766_v25 = vadd.f32 %v987_v19, %v905_v16 }
 0x1e0   : > { %v806_v26 = vadd.f32 %v805_v15, %v766_v25 }
 0x1e2   : > { %v811_v27 = vadd.f32 %v806_v26, %v1226_v24 }
 0x1e4   : > { %v812_v28 = vmax.f32 %v811_v27, 0.0 }
 0x1e6   : > { %813 = vst [vmem:[%s219_s12] sm:$0xff] %v812_v28 }
 0x1e7 PF: > { %s15_s18 = sadd.s32 1, %s1104_s18  }
 0x1e8   : > { %p12_p4 = scmp.ge.s32.totalorder %s15_s18, 4  }
 0x1ea   :  { %14 = sbr.rel (!%p12_p4) target bundleno = 1 (0x1), region = 70 }

</bundles_post_ra>
